<compile_context>
chip_gen: v7x
topology: tpu7x:2x2x1
jax: 0.10.0
libtpu: 0.0.40
codegen_flags: <defaults>
</compile_context>

<pallas_src>
import functools

import jax
import jax.numpy as jnp
from jax.experimental import pallas as pl
from jax.experimental.pallas import tpu as pltpu


def _round_up(x, m):
    return ((x + m - 1) // m) * m


def _attention_kernel(hidden_ref, enc_ref, wh_ref, we_ref, b_ref, v_ref, out_ref):
    """One batch tile.

    hidden_ref: [tB, D]       decoder hidden-state tile
    enc_ref:    [S, tB, E2]   encoder outputs in their ORIGINAL [S, B, E2] layout
    wh_ref:     [D, D]        attn-weight rows acting on hidden (cat puts hidden first)
    we_ref:     [E2, D]       attn-weight rows acting on encoder outputs
    b_ref:      [1, D]        attn bias
    v_ref:      [1, D]        scoring vector (Linear(dec_hid, 1, bias=False))
    out_ref:    [tB, S]       softmax scores: batch on sublanes, src_len on lanes
    """
    S, tB, E2 = enc_ref.shape
    D = wh_ref.shape[1]

    h = hidden_ref[...]
    enc = enc_ref[...]

    # Hidden contribution (shared across all source positions): [tB, D].
    # Operands stay in their input dtype (bf16 stays bf16 on the MXU); f32 accumulation.
    hW = jnp.dot(h, wh_ref[...], preferred_element_type=jnp.float32)

    # Encoder contribution: merge the (S, tB) leading dims into one 2-D MXU matmul.
    # tB is always a multiple of the 8-row sublane granule, so both reshapes are
    # layout-free leading-dim merges (no VMEM relayout copies).
    eW = jnp.dot(enc.reshape(S * tB, E2), we_ref[...],
                 preferred_element_type=jnp.float32).reshape(S, tB, D)

    # energy = tanh(attn([hidden; enc]))  -> [S, tB, D]   (EUP tanh, D on lanes).
    # NOTE: for narrow encoders (E2 < ~128) this tanh is the binding unit, not the MXU.
    energy = jnp.tanh(eW + hW[None, :, :] + b_ref[...][None, :, :])

    # score = energy . v as a VPU multiply + lane reduction (avoids an N=1 MXU
    # matmul and its relayout): [S, tB]
    scores = jnp.sum(energy * v_ref[...][None, :, :], axis=-1)

    # Re-orient so src_len sits on the lane axis: one small XLU transpose of the
    # [S, tB] score tile.  Softmax reductions become lane reductions (XLU slot)
    # and the output store is lane-dense (unmasked vst when S is a lane multiple).
    scores_t = scores.T                                    # [tB, S]

    # Softmax over src_len (lane axis).  When B is not a multiple of tB the padded
    # batch rows hold garbage (bounded by tanh, so finite); each row normalizes
    # independently and the wrapper trims them with [:B] — do NOT "fix" this into
    # a cross-row dependence.
    m = jnp.max(scores_t, axis=-1, keepdims=True)          # [tB, 1]
    e = jnp.exp(scores_t - m)
    denom = jnp.sum(e, axis=-1, keepdims=True)             # [tB, 1]
    # EUP vrcp (approx=True): ~2^-12 relative error, ample for attention weights;
    # the denominator is only [tB, 1] so this is essentially free either way.
    probs = e * pl.reciprocal(denom, approx=True)
    out_ref[...] = probs.astype(out_ref.dtype)


def _vmem_budget_bytes():
    """Physical VMEM minus ~25% headroom for Mosaic internal scratch / regalloc.

    v5e/v6e: 128 MiB -> ~96 MiB budget; v7x: 64 MiB -> ~48 MiB budget.
    """
    phys = 64 * 1024 * 1024  # conservative default = v7x per-TC size
    try:
        cap = int(pltpu.get_tpu_info().vmem_capacity_bytes)
        if cap > 0:
            phys = cap
    except Exception:
        pass
    return (phys * 3) // 4


@functools.partial(jax.jit, static_argnames=("max_batch_block",))
def attention_forward(hidden, encoder_outputs, w_attn, b_attn, w_v, *,
                      max_batch_block=128):
    """hidden: [B, D]; encoder_outputs: [S, B, E2] (PyTorch layout, NOT pre-permuted).

    w_attn: [D + E2, D] stored INPUT-major with the hidden rows FIRST — i.e.
            nn.Linear(enc_hid*2 + dec_hid, dec_hid).weight.T under the feature
            ordering of torch.cat((hidden_t, enc), dim=2).  A PyTorch port must
            transpose nn.Linear.weight or the result is silently wrong.
    b_attn: [D].   w_v: [D] (Linear(dec_hid, 1, bias=False), no bias).
    Returns softmax attention weights of shape [B, S] in the input dtype.
    """
    S, B, E2 = encoder_outputs.shape
    D = hidden.shape[1]
    assert w_attn.shape == (D + E2, D), (
        "w_attn must be input-major [dec_hid + enc_hid*2, dec_hid] with the hidden "
        "rows first; transpose nn.Linear.weight when porting from PyTorch.")

    out_dtype = jnp.result_type(hidden.dtype, encoder_outputs.dtype)
    enc_isz = jnp.dtype(encoder_outputs.dtype).itemsize
    hid_isz = jnp.dtype(hidden.dtype).itemsize
    w_isz = jnp.dtype(w_attn.dtype).itemsize
    out_isz = jnp.dtype(out_dtype).itemsize

    def _tile_bytes(tb):
        # Double-buffered pipelined blocks (enc tile dominates).
        io = 2 * (S * tb * E2 * enc_isz + tb * D * hid_isz + tb * S * out_isz)
        # Constant-index weights: single-buffered (pl.Buffered(1)).
        weights = (D * D + E2 * D + 2 * D) * w_isz
        # Energy-class f32 intermediates: eW, energy, energy*v, exp (+ score tiles).
        temps = 4 * S * tb * D * 4 + 2 * S * tb * 4
        return io + weights + temps

    budget = _vmem_budget_bytes()

    # ---- batch tile ---------------------------------------------------------
    # The batch axis is the sublane axis of every block and the M dimension of the
    # encoder matmul; make it as large as the VMEM budget allows (cap 128) so the
    # ~0.35us per-grid-step overhead is amortised and enc DMA descriptors are fat.
    tB = min(_round_up(B, 8), max_batch_block)
    while tB > 8 and _tile_bytes(tB) > budget:
        tB = _round_up(tB // 2, 8)
    # TODO(synk): if even tB == 8 overflows the budget (very long src_len * wide
    # dec_hid), add an "arbitrary" src_len grid axis with an online softmax
    # (running m/l scratch finalized via pl.when) instead of raising the limit.

    nb = pl.cdiv(B, tB)
    # v7x megacore: the "parallel" batch axis only splits across the two
    # TensorCores if there are >= 2 grid steps; halve the tile when possible.
    if nb == 1 and tB >= 16:
        tB = _round_up(max(tB // 2, 8), 8)
        nb = pl.cdiv(B, tB)

    vmem_limit = int(min(budget, max(32 * 1024 * 1024, 2 * _tile_bytes(tB))))

    w_h = w_attn[:D, :]               # [D, D]   rows acting on hidden
    w_e = w_attn[D:, :]               # [E2, D]  rows acting on encoder outputs
    b2 = b_attn.reshape(1, D)
    v2 = w_v.reshape(1, D)
    # TODO(synk): pad D/E2 once in the wrapper to MXU-array multiples (256 on
    # v6e/v7x, 128 on v5e) when they are unaligned, to avoid partial MXU passes.

    grid_spec = pltpu.PrefetchScalarGridSpec(
        num_scalar_prefetch=0,
        grid=(nb,),
        in_specs=[
            pl.BlockSpec((tB, D), lambda i: (i, 0)),            # hidden tile
            pl.BlockSpec((S, tB, E2), lambda i: (0, i, 0)),     # enc tile, no HBM transpose
            # Constant-index weights: fetched once, single-buffered (VMEM headroom).
            pl.BlockSpec((D, D), lambda i: (0, 0), pipeline_mode=pl.Buffered(1)),
            pl.BlockSpec((E2, D), lambda i: (0, 0), pipeline_mode=pl.Buffered(1)),
            pl.BlockSpec((1, D), lambda i: (0, 0), pipeline_mode=pl.Buffered(1)),
            pl.BlockSpec((1, D), lambda i: (0, 0), pipeline_mode=pl.Buffered(1)),
        ],
        out_specs=pl.BlockSpec((tB, S), lambda i: (i, 0)),      # lane-dense [tB, S]
    )

    out_padded = pl.pallas_call(
        _attention_kernel,
        out_shape=jax.ShapeDtypeStruct((nb * tB, S), out_dtype),
        grid_spec=grid_spec,
        compiler_params=pltpu.CompilerParams(
            dimension_semantics=("parallel",),   # megacore sharding on v7x
            vmem_limit_bytes=vmem_limit,
        ),
    )(hidden, encoder_outputs, w_h, w_e, b2, v2)

    # Output is already [B_pad, S]; just trim the padded batch rows.  No wrapper
    # transpose and no extra HBM round trip of anything larger than the scores.
    return out_padded[:B]


def attention_reference(hidden, encoder_outputs, w_attn, b_attn, w_v):
    """Pure-JAX replica of the PyTorch forward for validation."""
    S, B, E2 = encoder_outputs.shape
    D = hidden.shape[1]
    hidden_t = jnp.repeat(hidden[:, None, :], S, axis=1)              # [B, S, D]
    enc_bsd = jnp.transpose(encoder_outputs, (1, 0, 2))               # [B, S, E2]
    cat = jnp.concatenate([hidden_t, enc_bsd], axis=2)                # [B, S, D+E2]
    energy = jnp.tanh(cat @ w_attn + b_attn)                          # [B, S, D]
    scores = (energy @ w_v.reshape(D, 1)).reshape(B, S)
    return jax.nn.softmax(scores, axis=1)


if __name__ == "__main__":
    # Small shapes consistent with the module.
    batch = 2
    src_len = 8
    enc_hid_dim = 16
    dec_hid_dim = 32
    e2 = 2 * enc_hid_dim

    key = jax.random.PRNGKey(0)
    k1, k2, k3, k4, k5 = jax.random.split(key, 5)

    hidden = jax.random.normal(k1, (batch, dec_hid_dim), dtype=jnp.float32)
    encoder_outputs = jax.random.normal(k2, (src_len, batch, e2), dtype=jnp.float32)

    # Deterministic synthetic parameters (nn.Linear shapes, stored input-major).
    w_attn = 0.1 * jax.random.normal(k3, (dec_hid_dim + e2, dec_hid_dim), dtype=jnp.float32)
    b_attn = 0.1 * jax.random.normal(k4, (dec_hid_dim,), dtype=jnp.float32)
    w_v = 0.1 * jax.random.normal(k5, (dec_hid_dim,), dtype=jnp.float32)

    out = attention_forward(hidden, encoder_outputs, w_attn, b_attn, w_v)
    out = jax.block_until_ready(out)

    ref = attention_reference(hidden, encoder_outputs, w_attn, b_attn, w_v)
    assert out.shape == (batch, src_len), out.shape
    # Tolerances cover the approximate (EUP vrcp, ~2^-12 rel err) softmax reciprocal.
    assert jnp.allclose(out, ref, atol=2e-3, rtol=2e-3), "mismatch vs reference"
    assert jnp.allclose(jnp.sum(out, axis=1), 1.0, atol=2e-3), "softmax rows must sum to 1"

    print("KERNEL_OK")
</pallas_src>

<mosaic_0001>
module attributes {stable_mosaic.version = 11 : i64} {
  func.func @_attention_kernel(%arg0: i32, %arg1: memref<8x32xf32, #tpu.memory_space<vmem>>, %arg2: memref<8x8x32xf32, #tpu.memory_space<vmem>>, %arg3: memref<32x32xf32, #tpu.memory_space<vmem>>, %arg4: memref<32x32xf32, #tpu.memory_space<vmem>>, %arg5: memref<1x32xf32, #tpu.memory_space<vmem>>, %arg6: memref<1x32xf32, #tpu.memory_space<vmem>>, %arg7: memref<8x8xf32, #tpu.memory_space<vmem>>) attributes {dimension_semantics = [#tpu.dimension_semantics<parallel>], iteration_bounds = array<i64: 1>, scalar_prefetch = 0 : i64, scratch_operands = 0 : i64, tpu.core_type = #tpu.core_type<tc>, window_params = [{transform_indices = @transform_0, window_bounds = array<i64: 8, 32>}, {transform_indices = @transform_1, window_bounds = array<i64: 8, 8, 32>}, {pipeline_mode = #tpu.pipeline_mode<synchronous>, transform_indices = @transform_2, window_bounds = array<i64: 32, 32>}, {pipeline_mode = #tpu.pipeline_mode<synchronous>, transform_indices = @transform_3, window_bounds = array<i64: 32, 32>}, {pipeline_mode = #tpu.pipeline_mode<synchronous>, transform_indices = @transform_4, window_bounds = array<i64: 1, 32>}, {pipeline_mode = #tpu.pipeline_mode<synchronous>, transform_indices = @transform_5, window_bounds = array<i64: 1, 32>}, {transform_indices = @transform_6, window_bounds = array<i64: 8, 8>}]} {
    %c0 = arith.constant 0 : index
    %c0_0 = arith.constant 0 : index
    %0 = vector.load %arg1[%c0, %c0_0] : memref<8x32xf32, #tpu.memory_space<vmem>>, vector<8x32xf32>
    %c0_1 = arith.constant 0 : index
    %c0_2 = arith.constant 0 : index
    %c0_3 = arith.constant 0 : index
    %1 = vector.load %arg2[%c0_1, %c0_2, %c0_3] : memref<8x8x32xf32, #tpu.memory_space<vmem>>, vector<8x8x32xf32>
    %c0_4 = arith.constant 0 : index
    %c0_5 = arith.constant 0 : index
    %2 = vector.load %arg3[%c0_4, %c0_5] : memref<32x32xf32, #tpu.memory_space<vmem>>, vector<32x32xf32>
    %cst = arith.constant dense<0.000000e+00> : vector<8x32xf32>
    %3 = tpu.matmul %0, %2, %cst {dimension_numbers = #tpu.dot_dimension_numbers<[1], [0], [0], [1], [0, 0, 1, 1], [], []>} : vector<8x32xf32>, vector<32x32xf32>, vector<8x32xf32> -> vector<8x32xf32>
    %4 = vector.shape_cast %1 : vector<8x8x32xf32> to vector<64x32xf32>
    %c0_6 = arith.constant 0 : index
    %c0_7 = arith.constant 0 : index
    %5 = vector.load %arg4[%c0_6, %c0_7] : memref<32x32xf32, #tpu.memory_space<vmem>>, vector<32x32xf32>
    %cst_8 = arith.constant dense<0.000000e+00> : vector<64x32xf32>
    %6 = tpu.matmul %4, %5, %cst_8 {dimension_numbers = #tpu.dot_dimension_numbers<[1], [0], [0], [1], [0, 0, 1, 1], [], []>} : vector<64x32xf32>, vector<32x32xf32>, vector<64x32xf32> -> vector<64x32xf32>
    %7 = vector.shape_cast %6 : vector<64x32xf32> to vector<8x8x32xf32>
    %8 = vector.shape_cast %3 : vector<8x32xf32> to vector<1x8x32xf32>
    %9 = vector.broadcast %8 : vector<1x8x32xf32> to vector<8x8x32xf32>
    %10 = arith.addf %7, %9 : vector<8x8x32xf32>
    %c0_9 = arith.constant 0 : index
    %c0_10 = arith.constant 0 : index
    %11 = vector.load %arg5[%c0_9, %c0_10] : memref<1x32xf32, #tpu.memory_space<vmem>>, vector<1x32xf32>
    %12 = vector.shape_cast %11 : vector<1x32xf32> to vector<1x1x32xf32>
    %13 = vector.broadcast %12 : vector<1x1x32xf32> to vector<8x8x32xf32>
    %14 = arith.addf %10, %13 : vector<8x8x32xf32>
    %15 = math.tanh %14 : vector<8x8x32xf32>
    %c0_11 = arith.constant 0 : index
    %c0_12 = arith.constant 0 : index
    %16 = vector.load %arg6[%c0_11, %c0_12] : memref<1x32xf32, #tpu.memory_space<vmem>>, vector<1x32xf32>
    %17 = vector.shape_cast %16 : vector<1x32xf32> to vector<1x1x32xf32>
    %18 = vector.broadcast %17 : vector<1x1x32xf32> to vector<8x8x32xf32>
    %19 = arith.mulf %15, %18 : vector<8x8x32xf32>
    %cst_13 = arith.constant dense<0.000000e+00> : vector<8x8xf32>
    %20 = vector.multi_reduction <add>, %19, %cst_13 [2] : vector<8x8x32xf32> to vector<8x8xf32>
    %21 = tpu.transpose %20, [1, 0] : vector<8x8xf32> -> vector<8x8xf32>
    %cst_14 = arith.constant dense<0xFF800000> : vector<8xf32>
    %22 = vector.multi_reduction <maximumf>, %21, %cst_14 [1] : vector<8x8xf32> to vector<8xf32>
    %23 = vector.shape_cast %22 : vector<8xf32> to vector<8x1xf32>
    %24 = vector.broadcast %23 : vector<8x1xf32> to vector<8x8xf32>
    %25 = arith.subf %21, %24 : vector<8x8xf32>
    %26 = math.exp %25 : vector<8x8xf32>
    %cst_15 = arith.constant dense<0.000000e+00> : vector<8xf32>
    %27 = vector.multi_reduction <add>, %26, %cst_15 [1] : vector<8x8xf32> to vector<8xf32>
    %28 = vector.shape_cast %27 : vector<8xf32> to vector<8x1xf32>
    %29 = tpu.reciprocal %28 {approx = true} : vector<8x1xf32> -> vector<8x1xf32>
    %30 = vector.broadcast %29 : vector<8x1xf32> to vector<8x8xf32>
    %31 = arith.mulf %26, %30 : vector<8x8xf32>
    %c0_16 = arith.constant 0 : index
    %c0_17 = arith.constant 0 : index
    %32 = vector.load %arg7[%c0_16, %c0_17] : memref<8x8xf32, #tpu.memory_space<vmem>>, vector<8x8xf32>
    tpu.vector_store %arg7[%c0_16, %c0_17], %31 {strides = array<i32>} : memref<8x8xf32, #tpu.memory_space<vmem>>, vector<8x8xf32>,
    return
  }
  func.func @transform_0(%arg0: i32) -> (i32, i32) {
    %c0_i32 = arith.constant 0 : i32
    %c0_i32_0 = arith.constant 0 : i32
    return %arg0, %c0_i32 : i32, i32
  }
  func.func @transform_1(%arg0: i32) -> (i32, i32, i32) {
    %c0_i32 = arith.constant 0 : i32
    %c0_i32_0 = arith.constant 0 : i32
    %c0_i32_1 = arith.constant 0 : i32
    return %c0_i32, %arg0, %c0_i32_0 : i32, i32, i32
  }
  func.func @transform_2(%arg0: i32) -> (i32, i32) {
    %c0_i32 = arith.constant 0 : i32
    %c0_i32_0 = arith.constant 0 : i32
    %c0_i32_1 = arith.constant 0 : i32
    return %c0_i32, %c0_i32_0 : i32, i32
  }
  func.func @transform_3(%arg0: i32) -> (i32, i32) {
    %c0_i32 = arith.constant 0 : i32
    %c0_i32_0 = arith.constant 0 : i32
    %c0_i32_1 = arith.constant 0 : i32
    return %c0_i32, %c0_i32_0 : i32, i32
  }
  func.func @transform_4(%arg0: i32) -> (i32, i32) {
    %c0_i32 = arith.constant 0 : i32
    %c0_i32_0 = arith.constant 0 : i32
    %c0_i32_1 = arith.constant 0 : i32
    return %c0_i32, %c0_i32_0 : i32, i32
  }
  func.func @transform_5(%arg0: i32) -> (i32, i32) {
    %c0_i32 = arith.constant 0 : i32
    %c0_i32_0 = arith.constant 0 : i32
    %c0_i32_1 = arith.constant 0 : i32
    return %c0_i32, %c0_i32_0 : i32, i32
  }
  func.func @transform_6(%arg0: i32) -> (i32, i32) {
    %c0_i32 = arith.constant 0 : i32
    %c0_i32_0 = arith.constant 0 : i32
    return %arg0, %c0_i32 : i32, i32
  }
}

</mosaic_0001>

<bundles_post_ra>
// kernel: attention_forward.1
= control target key start
LH: loop header
LB: loop body
LE: loop exit
PB: predicated region body
PF: predicated region fallthrough
CT: control target
= control target key end

     0   :  { %v592_v3 = vmov 0.0|0.0   ;;  %vm593_vm0 = vmmov 0   ;;  %v594_v8 = vmov 0.0   ;;  %vm105_vm1 = vcmask 261120   ;;  %s707_s0 = inlined_call_operand.vmem [shape: f32[2,32], index: 0, kind: input, shape index: {}]   ;;  %s708_s1 = inlined_call_operand.vmem [shape: f32[8,2,32], index: 1, kind: input, shape index: {}]   ;;  %s709_s2 = inlined_call_operand.vmem [shape: f32[32,32], index: 2, kind: input, shape index: {}]   ;;  %s710_s3 = inlined_call_operand.vmem [shape: f32[32,32], index: 3, kind: input, shape index: {}]   ;;  %s711_s4 = inlined_call_operand.vmem [shape: f32[1,32], index: 4, kind: input, shape index: {}]   ;;  %s712_s5 = inlined_call_operand.vmem [shape: f32[1,32], index: 5, kind: input, shape index: {}]   ;;  %s713_s6 = inlined_call_operand.vmem [shape: f32[8,8], index: 6, kind: output, shape index: {}]  }
   0x1   :  { %v101_v0 = vld [vmem:[%s709_s2] sm:$0xff]  ;;  %v102_v1 = vld [vmem:[%s709_s2 + $0x8] sm:$0xff]  ;;  %551 = vmatprep.subr.bf16.mxu0 %v592_v3  ;;  %v103_v6 = vld [vmem:[%s709_s2 + $0x10] sm:$0xff]  ;;  %528 = vmatprep.mubr.msk.f32.mxu0 %vm593_vm0, %v594_v8  ;;  %vm424_vm2 = vcmask 1041409   ;;  %vm426_vm3 = vcmask 1042434   ;;  %vm428_vm4 = vcmask 1043459  }
   0x2   :  { %v179_v2 = vld [vmem:[%s710_s3] sm:$0xff]  ;;  %v552_v4 = vpack.c.bf16 %v102_v1, %v101_v0  ;;  %v180_v5 = vld [vmem:[%s710_s3 + $0x8] sm:$0xff]  ;;  %v104_v7 = vld [vmem:[%s709_s2 + $0x18] sm:$0xff]  ;;  %vm430_vm5 = vcmask 1044484   ;;  %vm432_vm6 = vcmask 1045509   ;;  %vm434_vm7 = vcmask 1046534  }
   0x3   :  { %v557_v9 = vpack.c.bf16 %v180_v5, %v179_v2  ;;  %v181_v10 = vld [vmem:[%s710_s3 + $0x10] sm:$0xff]  ;;  %v182_v11 = vld [vmem:[%s710_s3 + $0x18] sm:$0xff]  ;;  %v555_v12 = vpack.c.bf16 %v104_v7, %v103_v6  ;;  %v34_v14 = vld [vmem:[%s708_s1 + $0x4] sm:$0x3]  ;;  %vm436_vm8 = vcmask 1047559   ;;  %vm471_vm9 = vcmask 64512  }
   0x4   :  { %553 = vmatpush3.bf16.msra.mxu0 %v552_v4  ;;  %v561_v13 = vpack.c.bf16 %v182_v11, %v181_v10  ;;  %v36_v15 = vld [vmem:[%s708_s1 + $0x6] sm:$0x3]  ;;  %v38_v16 = vld [vmem:[%s708_s1 + $0x8] sm:$0x3]  ;;  %35 = vst [vmem:[#allocation2 + $0x10] sm:$0x3] %v34_v14 }
   0x5   :  { %565 = vmatprep.subr.bf16.mxu1 %v557_v9  ;;  %554 = vmatprep.subr.bf16.mxu0 %v592_v3  ;;  %37 = vst [vmem:[#allocation2 + $0x18] sm:$0x3] %v36_v15  ;;  %39 = vst [vmem:[#allocation2 + $0x20] sm:$0x3] %v38_v16  ;;  %v40_v17 = vld [vmem:[%s708_s1 + $0xa] sm:$0x3] }
   0x6   :  { %v30_v18 = vld [vmem:[%s708_s1] sm:$0x3]  ;;  %v32_v19 = vld [vmem:[%s708_s1 + $0x2] sm:$0x3]  ;;  %567 = vmatpush3.bf16.msra.mxu1 %v557_v9  ;;  %41 = vst [vmem:[#allocation2 + $0x28] sm:$0x3] %v40_v17 }
   0x7   :  { %31 = vst [vmem:[#allocation2] sm:$0x3] %v30_v18  ;;  %33 = vst [vmem:[#allocation2 + $0x8] sm:$0x3] %v32_v19  ;;  %v42_v20 = vld [vmem:[%s708_s1 + $0xc] sm:$0x3]  ;;  %566 = vmatprep.subr.bf16.mxu1 %v561_v13 }
   0x8   :  { %v44_v21 = vld [vmem:[%s708_s1 + $0xe] sm:$0x3]  ;;  %43 = vst [vmem:[#allocation2 + $0x30] sm:$0x3] %v42_v20  ;;  %556 = vmatpush3.bf16.msra.mxu0 %v555_v12  ;;  %v92_v22 = vld [vmem:[%s707_s0] sm:$0xff]  ;;  %v390_v20 = vlaneseq }
   0x9   :  { %45 = vst [vmem:[#allocation2 + $0x38] sm:$0x3] %v44_v21  ;;  %558 = vmatprep.subr.bf16.mxu0 %v557_v9  ;;  %v501_v34 = vld [vmem:[%s711_s4] ss:$0 sm:$0xff] }
   0xa   :  { %568 = vmatpush3.bf16.msra.mxu1 %v561_v13  ;;  %v502_v57 = vld [vmem:[%s712_s5] ss:$0 sm:$0xff]  ;;  %v391_v21 = vand.u32 127, %v390_v20 }
   0xb   :  { %529 = vmatmul.mubr.msk.f32.vlgmr.msra.gmra.mrb[0].mxu0 %vm105_vm1, %v92_v22  ;;  %v95_v23 = vld [vmem:[#allocation2 + $0x10] sm:$0xff]  ;;  %v393_v22 = vshrl.u32 %v390_v20, 7 }
   0xc   :  { %560 = vmatpush3.bf16.msra.mxu0 %v557_v9  ;;  %v96_v24 = vld [vmem:[#allocation2 + $0x18] sm:$0xff]  ;;  %v97_v25 = vld [vmem:[#allocation2 + $0x20] sm:$0xff]  ;;  %542 = vmatprep.mubr.msk.f32.mxu1 %vm105_vm1, %v95_v23 }
   0xd   :  { %562 = vmatprep.subr.bf16.mxu0 %v561_v13  ;;  %543 = vmatmul.mubr.msk.f32.vlgmr.msra.gmra.mrb[0].mxu1 %vm105_vm1, %v96_v24  ;;  %v98_v27 = vld [vmem:[#allocation2 + $0x28] sm:$0xff] }
   0xe   :  { %v93_v26 = vld [vmem:[#allocation2] sm:$0xff]  ;;  %545 = vmatprep.mubr.msk.f32.mxu1 %vm105_vm1, %v97_v25  ;;  %v94_v28 = vld [vmem:[#allocation2 + $0x8] sm:$0xff]  ;;  %v394_v25 = vsub.s32 %v391_v21, %v393_v22 }
   0xf   :  { %539 = vmatprep.mubr.msk.f32.mxu0 %vm105_vm1, %v93_v26  ;;  %v99_v29 = vld [vmem:[#allocation2 + $0x30] sm:$0xff] }
  0x10   :  { %564 = vmatpush3.bf16.msra.mxu0 %v561_v13  ;;  %v100_v30 = vld [vmem:[#allocation2 + $0x38] sm:$0xff] }
  0x11   :  { %546 = vmatmul.mubr.msk.f32.gmra.mrb[2].mxu1 %vm105_vm1, %v98_v27 }
  0x12   :  { %548 = vmatprep.mubr.msk.f32.mxu1 %vm105_vm1, %v99_v29 }
  0x13   :  { %540 = vmatmul.mubr.msk.f32.vlgmr.msra.gmra.mrb[2].mxu0 %vm105_vm1, %v94_v28 }
  0x15   :  { %549 = vmatmul.mubr.msk.f32.gmra.mrb[4].mxu1 %vm105_vm1, %v100_v30 }
  0xde   :  { %v175_v31 = vpop.f32.mrb[0].mxu0 }
  0xdf   :  { %v530_v32 = vpop.f32.mrb[1].mxu0 }
  0xe0   :  { %v544_v33 = vpop.f32.mrb[0].mxu1 }
  0xe1   :  { %v315_v35 = vadd.f32 %v544_v33, %v175_v31  ;;  %v283_v36 = vpop.f32.mrb[1].mxu1 }
  0xe2   :  { %v314_v37 = vadd.f32 %v283_v36, %v175_v31 }
  0xe3   :  { %v330_v38 = vadd.f32 %v501_v34, %v315_v35 }
  0xe4   :  { %v329_v39 = vadd.f32 %v501_v34, %v314_v37  ;;  %v547_v40 = vpop.f32.mrb[2].mxu1 }
  0xe5   :  { %572 = vtanh.f32 %v330_v38  ;;  %v317_v41 = vadd.f32 %v547_v40, %v175_v31  ;;  %v293_v42 = vpop.f32.mrb[3].mxu1 }
  0xe6   :  { %v541_v43 = vpop.f32.mrb[2].mxu0  ;;  %574 = vtanh.f32 %v329_v39  ;;  %v316_v44 = vadd.f32 %v293_v42, %v175_v31 }
  0xe7   :  { %v313_v45 = vadd.f32 %v541_v43, %v175_v31  ;;  %v273_v46 = vpop.f32.mrb[3].mxu0  ;;  %v332_v47 = vadd.f32 %v501_v34, %v317_v41 }
  0xe8   :  { %v312_v48 = vadd.f32 %v273_v46, %v175_v31  ;;  %v550_v50 = vpop.f32.mrb[4].mxu1  ;;  %v331_v55 = vadd.f32 %v501_v34, %v316_v44 }
  0xe9   :  { %v328_v49 = vadd.f32 %v501_v34, %v313_v45  ;;  %576 = vtanh.f32 %v332_v47  ;;  %v319_v52 = vadd.f32 %v550_v50, %v175_v31  ;;  %v303_v53 = vpop.f32.mrb[5].mxu1 }
  0xea   :  { %v327_v51 = vadd.f32 %v501_v34, %v312_v48  ;;  %v318_v54 = vadd.f32 %v303_v53, %v175_v31 }
  0xeb   :  { %578 = vtanh.f32 %v328_v49  ;;  %v334_v56 = vadd.f32 %v501_v34, %v319_v52 }
  0xec   :  { %580 = vtanh.f32 %v327_v51  ;;  %v333_v59 = vadd.f32 %v501_v34, %v318_v54 }
  0xed   :  { %582 = vtanh.f32 %v334_v56 }
  0xee   :  { %584 = vtanh.f32 %v331_v55 }
  0xef   :  { %v573_v58 = vpop.eup %572  ;;  %586 = vtanh.f32 %v333_v59 }
  0xf0   :  { %v575_v60 = vpop.eup %574  ;;  %v353_v61 = vmul.f32 %v573_v58, %v502_v57 }
  0xf1   :  { %v352_v63 = vmul.f32 %v575_v60, %v502_v57 }
  0xf2   :  { %v367_v62 = vsel %vm105_vm1, %v353_v61, 0.0 }
  0xf3   :  { %v577_v0 = vpop.eup %576  ;;  %368 = vadd.xlane.f32.xlu1 %v367_v62  ;;  %v364_v3 = vsel %vm105_vm1, %v352_v63, 0.0 }
  0xf4   :  { %v355_v5 = vmul.f32 %v577_v0, %v502_v57 }
  0xf5   :  { %v579_v1 = vpop.eup %578 }
  0xf6   :  { %v581_v2 = vpop.eup %580  ;;  %v351_v4 = vmul.f32 %v579_v1, %v502_v57  ;;  %v373_v10 = vsel %vm105_vm1, %v355_v5, 0.0 }
  0xf7   :  { %v583_v6 = vpop.eup %582  ;;  %365 = vadd.xlane.f32.xlu1 %v364_v3  ;;  %v350_v8 = vmul.f32 %v581_v2, %v502_v57 }
  0xf8   :  { %v361_v7 = vsel %vm105_vm1, %v351_v4, 0.0  ;;  %v585_v9 = vpop.eup %584  ;;  %v357_v11 = vmul.f32 %v583_v6, %v502_v57 }
  0xf9   :  { %362 = vadd.xlane.f32.xlu0 %v361_v7  ;;  %v358_v12 = vsel %vm105_vm1, %v350_v8, 0.0  ;;  %v354_v13 = vmul.f32 %v585_v9, %v502_v57  ;;  %v587_v14 = vpop.eup %586 }
  0xfa   :  { %v379_v15 = vsel %vm105_vm1, %v357_v11, 0.0  ;;  %v356_v17 = vmul.f32 %v587_v14, %v502_v57 }
  0xfb   :  { %374 = vadd.xlane.f32.xlu1 %v373_v10  ;;  %v370_v16 = vsel %vm105_vm1, %v354_v13, 0.0 }
  0xfc   :  { %v376_v18 = vsel %vm105_vm1, %v356_v17, 0.0 }
  0xfd   :  { %359 = vadd.xlane.f32.xlu0 %v358_v12 }
  0xff   :  { %380 = vadd.xlane.f32.xlu1 %v379_v15 }
 0x101   :  { %371 = vadd.xlane.f32.xlu0 %v370_v16 }
 0x105   :  { %377 = vadd.xlane.f32.xlu0 %v376_v18 }
 0x180   :  { %v369_v19 = vpop.xlane.xlu1 %368 }
 0x181   :  { %v407_v31 = vrot.slane %v369_v19, %v394_v25 }
 0x184   :  { %v366_v23 = vpop.xlane.xlu1 %365 }
 0x185   :  { %v403_v30 = vrot.slane %v366_v23, %v394_v25 }
 0x186   :  { %v363_v24 = vpop.xlane.xlu0 %362 }
 0x187   :  { %v399_v27 = vrot.slane %v363_v24, %v394_v25 }
 0x188   :  { %v375_v28 = vpop.xlane.xlu1 %374 }
 0x189   :  { %v415_v39 = vrot.slane %v375_v28, %v394_v25 }
 0x18a   :  { %v360_v26 = vpop.xlane.xlu0 %359 }
 0x18b   :  { %v395_v29 = vrot.slane %v360_v26, %v394_v25 }
 0x18c   :  { %v381_v37 = vpop.xlane.xlu1 %380 }
 0x18d   :  { %v425_v32 = vsel %vm424_vm2, %v399_v27, %v395_v29  ;;  %v423_v42 = vrot.slane %v381_v37, %v394_v25 }
 0x18e   :  { %v427_v33 = vsel %vm426_vm3, %v403_v30, %v425_v32  ;;  %v372_v34 = vpop.xlane.xlu0 %371 }
 0x18f   :  { %v429_v35 = vsel %vm428_vm4, %v407_v31, %v427_v33  ;;  %v411_v36 = vrot.slane %v372_v34, %v394_v25 }
 0x191   :  { %v431_v38 = vsel %vm430_vm5, %v411_v36, %v429_v35 }
 0x192   :  { %v378_v40 = vpop.xlane.xlu0 %377  ;;  %v433_v43 = vsel %vm432_vm6, %v415_v39, %v431_v38 }
 0x193   :  { %v419_v41 = vrot.slane %v378_v40, %v394_v25 }
 0x195   :  { %v435_v44 = vsel %vm434_vm7, %v419_v41, %v433_v43 }
 0x196   :  { %v437_v45 = vsel %vm436_vm8, %v423_v42, %v435_v44 }
 0x197   :  { %439 = vxpose.xlu0.b32.start.end [1/1] (short) (narrow) %v437_v45, 8 }
 0x217   :  { %v455_v46 = vpop.trf.xlu0 }
 0x218   :  { %v472_v47 = vsel %vm471_vm9, %v455_v46, -inf }
 0x219   :  { %473 = vmax.xlane.f32.xlu1 %v472_v47 }
 0x2a6   :  { %v474_v48 = vpop.xlane.xlu1 %473 }
 0x2a7   :  { %v475_v49 = vsub.f32 %v455_v46, %v474_v48 }
 0x2a9   :  { %v476_v50 = vmul.f32 1.442695, %v475_v49 }
 0x2ab   :  { %588 = vpow2.f32 %v476_v50 }
 0x2b5   :  { %v589_v51 = vpop.eup %588 }
 0x2b6   :  { %v478_v52 = vsel %vm471_vm9, %v589_v51, 0.0 }
 0x2b7   :  { %479 = vadd.xlane.f32.xlu1 %v478_v52 }
 0x344   :  { %v480_v53 = vpop.xlane.xlu1 %479 }
 0x345   :  { %590 = vrcp.f32 %v480_v53 }
 0x34f   :  { %v591_v54 = vpop.eup %590 }
 0x350   :  { %v482_v55 = vmul.f32 %v591_v54, %v589_v51 }
 0x352   :  { %483 = vst.msk [vmem:[%s713_s6] sm:$0xff] %vm471_vm9, %v482_v55 }

</bundles_post_ra>
